<compile_context>
chip_gen: v7x
topology: tpu7x:2x2x1
jax: 0.10.0
libtpu: 0.0.40
codegen_flags: <defaults>
</compile_context>

<pallas_src>
import jax
import jax.numpy as jnp
import numpy as np
from jax import lax
from jax.experimental import pallas as pl
from jax.experimental.pallas import tpu as pltpu

LN_EPS = 1e-5   # torch.nn.LayerNorm default
LANE = 128      # pad final output to a lane-dense width


# ------------------------------ in-kernel math ------------------------------
def _relu(x):
    return jnp.maximum(x, 0.0)


def _layer_norm(x, gamma, beta):
    mu = jnp.mean(x, axis=-1, keepdims=True)
    var = jnp.mean((x - mu) ** 2, axis=-1, keepdims=True)   # biased var (torch)
    return (x - mu) * lax.rsqrt(var + LN_EPS) * gamma + beta


def _make_kernel(n_heads, head_dim):
    scale = 1.0 / float(np.sqrt(head_dim))

    def kernel(x_ref,
               wq_ref, wk_ref, wv_ref, bq_ref, bk_ref, bv_ref,
               wo_ref, bo_ref,
               ln_g_ref, ln_b_ref,
               wlv_ref, blv_ref, w1_ref, b1_ref, w2_ref, b2_ref,
               w3_ref, b3_ref,
               out_ref):
        x = x_ref[...]                                                    # (S, E)

        # ---- multi-head self-attention (across the S rows, PyTorch unbatched path) ----
        q = jnp.dot(x, wq_ref[...], preferred_element_type=jnp.float32) + bq_ref[...]
        k = jnp.dot(x, wk_ref[...], preferred_element_type=jnp.float32) + bk_ref[...]
        v = jnp.dot(x, wv_ref[...], preferred_element_type=jnp.float32) + bv_ref[...]

        heads = []
        for h in range(n_heads):                                          # static unroll
            lo = h * head_dim
            qh = q[:, lo:lo + head_dim] * scale                           # (S, Dh)
            kh = k[:, lo:lo + head_dim]
            vh = v[:, lo:lo + head_dim]
            # scores = qh @ kh.T without materializing a transpose
            s = lax.dot_general(qh, kh, (((1,), (1,)), ((), ())),
                                preferred_element_type=jnp.float32)       # (S, S)
            s = s - jnp.max(s, axis=-1, keepdims=True)
            p = jnp.exp(s)
            p = p / jnp.sum(p, axis=-1, keepdims=True)
            heads.append(jnp.dot(p, vh, preferred_element_type=jnp.float32))
        attn = jnp.concatenate(heads, axis=-1)                            # (S, E)
        attn = jnp.dot(attn, wo_ref[...],
                       preferred_element_type=jnp.float32) + bo_ref[...]

        # ---- residual + LayerNorm + MLP value head ----
        hn = _layer_norm(x + attn, ln_g_ref[...], ln_b_ref[...])
        z = _relu(jnp.dot(hn, wlv_ref[...],
                          preferred_element_type=jnp.float32) + blv_ref[...])   # (S, 128)
        z = _relu(jnp.dot(z, w1_ref[...],
                          preferred_element_type=jnp.float32) + b1_ref[...])    # (S, 64)
        z = _relu(jnp.dot(z, w2_ref[...],
                          preferred_element_type=jnp.float32) + b2_ref[...])    # (S, 32)
        # TODO(synk): nn.Dropout(0.5) is identity in eval mode; train-mode RNG dropout
        #             is not implemented in-kernel.
        val = jnp.dot(z, w3_ref[...],
                      preferred_element_type=jnp.float32) + b3_ref[...]         # (S, 128) lane-dense
        out_ref[...] = val.astype(out_ref.dtype)

    return kernel


# ------------------------------ parameter packing ----------------------------
def pack_params(torch_params, n_agents):
    """Take PyTorch-layout params ((out,in) weights, 1-D biases) and pre-pack them:
    split in_proj, transpose every weight to (in,out), reshape biases to (1,d),
    zero-pad the final layer to LANE output columns."""
    (in_proj_w, in_proj_b, out_proj_w, out_proj_b,
     ln_g, ln_b,
     lv_w, lv_b, h1_w, h1_b, h2_w, h2_b, vo_w, vo_b) = torch_params
    E = out_proj_w.shape[0]

    wq, wk, wv = in_proj_w[:E], in_proj_w[E:2 * E], in_proj_w[2 * E:]
    bq, bk, bv = in_proj_b[:E], in_proj_b[E:2 * E], in_proj_b[2 * E:]

    pad = LANE - n_agents
    vo_w_p = jnp.pad(vo_w, ((0, pad), (0, 0)))          # (LANE, 32) torch layout
    vo_b_p = jnp.pad(vo_b, ((0, pad),))                 # (LANE,)

    t = lambda w: jnp.asarray(w, jnp.float32).T         # (out,in) -> (in,out)
    r = lambda b: jnp.asarray(b, jnp.float32).reshape(1, -1)

    return (t(wq), t(wk), t(wv), r(bq), r(bk), r(bv),
            t(out_proj_w), r(out_proj_b),
            r(ln_g), r(ln_b),
            t(lv_w), r(lv_b), t(h1_w), r(h1_b), t(h2_w), r(h2_b),
            t(vo_w_p), r(vo_b_p))


# --------------------------------- forward ----------------------------------
def mlp_critic_forward(obs, packed, n_agents, obs_space_size):
    """obs: (S, obs_space_size * n_agents) f32.  Returns (S, n_agents) values."""
    S = obs.shape[0]
    kernel = _make_kernel(n_heads=n_agents, head_dim=obs_space_size)
    flat = [obs] + list(packed)
    vmem = pltpu.MemorySpace.VMEM
    out_padded = pl.pallas_call(
        kernel,
        out_shape=jax.ShapeDtypeStruct((S, LANE), jnp.float32),
        # Everything is small -> no grid; full-array blocks resident in VMEM.
        in_specs=[pl.BlockSpec(memory_space=vmem) for _ in flat],
        out_specs=pl.BlockSpec(memory_space=vmem),
    )(*flat)
    return out_padded[:, :n_agents]


# ------------------------- pure-JAX reference (torch math) -------------------
def torch_reference(obs, torch_params, n_heads):
    (in_proj_w, in_proj_b, out_proj_w, out_proj_b,
     ln_g, ln_b,
     lv_w, lv_b, h1_w, h1_b, h2_w, h2_b, vo_w, vo_b) = torch_params
    E = out_proj_w.shape[0]
    Dh = E // n_heads
    S = obs.shape[0]

    qkv = obs @ in_proj_w.T + in_proj_b
    q, k, v = qkv[:, :E], qkv[:, E:2 * E], qkv[:, 2 * E:]
    qh = q.reshape(S, n_heads, Dh).transpose(1, 0, 2)
    kh = k.reshape(S, n_heads, Dh).transpose(1, 0, 2)
    vh = v.reshape(S, n_heads, Dh).transpose(1, 0, 2)
    scores = jnp.einsum('hsd,htd->hst', qh, kh) / np.sqrt(Dh)
    p = jax.nn.softmax(scores, axis=-1)
    o = jnp.einsum('hst,htd->hsd', p, vh).transpose(1, 0, 2).reshape(S, E)
    attn = o @ out_proj_w.T + out_proj_b

    x = obs + attn
    mu = x.mean(-1, keepdims=True)
    var = ((x - mu) ** 2).mean(-1, keepdims=True)
    xn = (x - mu) / jnp.sqrt(var + LN_EPS) * ln_g + ln_b

    z = jax.nn.relu(xn @ lv_w.T + lv_b)
    z = jax.nn.relu(z @ h1_w.T + h1_b)
    z = jax.nn.relu(z @ h2_w.T + h2_b)
    return z @ vo_w.T + vo_b            # dropout = identity (eval mode)


# ----------------------------------- main ------------------------------------
if __name__ == "__main__":
    obs_space_size, n_agents, S = 16, 4, 8
    E = obs_space_size * n_agents        # 64; num_heads = 4, head_dim = 16

    key = jax.random.PRNGKey(0)
    ks = jax.random.split(key, 16)
    rnd = lambda k, shape, s=0.1: s * jax.random.normal(k, shape, jnp.float32)

    # PyTorch-layout parameters.
    in_proj_w = rnd(ks[0], (3 * E, E))
    in_proj_b = rnd(ks[1], (3 * E,))
    out_proj_w = rnd(ks[2], (E, E))
    out_proj_b = rnd(ks[3], (E,))
    ln_g = 1.0 + rnd(ks[4], (E,))
    ln_b = rnd(ks[5], (E,))
    lv_w = rnd(ks[6], (128, E)); lv_b = rnd(ks[7], (128,))
    h1_w = rnd(ks[8], (64, 128)); h1_b = rnd(ks[9], (64,))
    h2_w = rnd(ks[10], (32, 64)); h2_b = rnd(ks[11], (32,))
    vo_w = rnd(ks[12], (n_agents, 32)); vo_b = rnd(ks[13], (n_agents,))

    torch_params = (in_proj_w, in_proj_b, out_proj_w, out_proj_b,
                    ln_g, ln_b, lv_w, lv_b, h1_w, h1_b, h2_w, h2_b, vo_w, vo_b)

    obs = jax.random.normal(ks[14], (S, E), jnp.float32)

    packed = pack_params(torch_params, n_agents)
    out = jax.block_until_ready(
        mlp_critic_forward(obs, packed, n_agents, obs_space_size))

    expected = jax.block_until_ready(torch_reference(obs, torch_params, n_agents))

    assert out.shape == (S, n_agents)
    np.testing.assert_allclose(np.asarray(out), np.asarray(expected),
                               rtol=1e-4, atol=1e-4)
    print("KERNEL_OK")
</pallas_src>

<mosaic_0001>
module attributes {stable_mosaic.version = 11 : i64} {
  func.func @kernel(%arg0: memref<8x64xf32, #tpu.memory_space<vmem>>, %arg1: memref<64x64xf32, #tpu.memory_space<vmem>>, %arg2: memref<64x64xf32, #tpu.memory_space<vmem>>, %arg3: memref<64x64xf32, #tpu.memory_space<vmem>>, %arg4: memref<1x64xf32, #tpu.memory_space<vmem>>, %arg5: memref<1x64xf32, #tpu.memory_space<vmem>>, %arg6: memref<1x64xf32, #tpu.memory_space<vmem>>, %arg7: memref<64x64xf32, #tpu.memory_space<vmem>>, %arg8: memref<1x64xf32, #tpu.memory_space<vmem>>, %arg9: memref<1x64xf32, #tpu.memory_space<vmem>>, %arg10: memref<1x64xf32, #tpu.memory_space<vmem>>, %arg11: memref<64x128xf32, #tpu.memory_space<vmem>>, %arg12: memref<1x128xf32, #tpu.memory_space<vmem>>, %arg13: memref<128x64xf32, #tpu.memory_space<vmem>>, %arg14: memref<1x64xf32, #tpu.memory_space<vmem>>, %arg15: memref<64x32xf32, #tpu.memory_space<vmem>>, %arg16: memref<1x32xf32, #tpu.memory_space<vmem>>, %arg17: memref<32x128xf32, #tpu.memory_space<vmem>>, %arg18: memref<1x128xf32, #tpu.memory_space<vmem>>, %arg19: memref<8x128xf32, #tpu.memory_space<vmem>>) attributes {dimension_semantics = [], scalar_prefetch = 0 : i64, scratch_operands = 0 : i64, tpu.core_type = #tpu.core_type<tc>} {
    %c0 = arith.constant 0 : index
    %c0_0 = arith.constant 0 : index
    %0 = vector.load %arg0[%c0, %c0_0] : memref<8x64xf32, #tpu.memory_space<vmem>>, vector<8x64xf32>
    %c0_1 = arith.constant 0 : index
    %c0_2 = arith.constant 0 : index
    %1 = vector.load %arg1[%c0_1, %c0_2] : memref<64x64xf32, #tpu.memory_space<vmem>>, vector<64x64xf32>
    %cst = arith.constant dense<0.000000e+00> : vector<8x64xf32>
    %2 = tpu.matmul %0, %1, %cst {dimension_numbers = #tpu.dot_dimension_numbers<[1], [0], [0], [1], [0, 0, 1, 1], [], []>} : vector<8x64xf32>, vector<64x64xf32>, vector<8x64xf32> -> vector<8x64xf32>
    %c0_3 = arith.constant 0 : index
    %c0_4 = arith.constant 0 : index
    %3 = vector.load %arg4[%c0_3, %c0_4] : memref<1x64xf32, #tpu.memory_space<vmem>>, vector<1x64xf32>
    %4 = vector.broadcast %3 : vector<1x64xf32> to vector<8x64xf32>
    %5 = arith.addf %2, %4 : vector<8x64xf32>
    %c0_5 = arith.constant 0 : index
    %c0_6 = arith.constant 0 : index
    %6 = vector.load %arg2[%c0_5, %c0_6] : memref<64x64xf32, #tpu.memory_space<vmem>>, vector<64x64xf32>
    %cst_7 = arith.constant dense<0.000000e+00> : vector<8x64xf32>
    %7 = tpu.matmul %0, %6, %cst_7 {dimension_numbers = #tpu.dot_dimension_numbers<[1], [0], [0], [1], [0, 0, 1, 1], [], []>} : vector<8x64xf32>, vector<64x64xf32>, vector<8x64xf32> -> vector<8x64xf32>
    %c0_8 = arith.constant 0 : index
    %c0_9 = arith.constant 0 : index
    %8 = vector.load %arg5[%c0_8, %c0_9] : memref<1x64xf32, #tpu.memory_space<vmem>>, vector<1x64xf32>
    %9 = vector.broadcast %8 : vector<1x64xf32> to vector<8x64xf32>
    %10 = arith.addf %7, %9 : vector<8x64xf32>
    %c0_10 = arith.constant 0 : index
    %c0_11 = arith.constant 0 : index
    %11 = vector.load %arg3[%c0_10, %c0_11] : memref<64x64xf32, #tpu.memory_space<vmem>>, vector<64x64xf32>
    %cst_12 = arith.constant dense<0.000000e+00> : vector<8x64xf32>
    %12 = tpu.matmul %0, %11, %cst_12 {dimension_numbers = #tpu.dot_dimension_numbers<[1], [0], [0], [1], [0, 0, 1, 1], [], []>} : vector<8x64xf32>, vector<64x64xf32>, vector<8x64xf32> -> vector<8x64xf32>
    %c0_13 = arith.constant 0 : index
    %c0_14 = arith.constant 0 : index
    %13 = vector.load %arg6[%c0_13, %c0_14] : memref<1x64xf32, #tpu.memory_space<vmem>>, vector<1x64xf32>
    %14 = vector.broadcast %13 : vector<1x64xf32> to vector<8x64xf32>
    %15 = arith.addf %12, %14 : vector<8x64xf32>
    %16 = vector.extract_strided_slice %5 {offsets = [0, 0], sizes = [8, 16], strides = [1, 1]} : vector<8x64xf32> to vector<8x16xf32>
    %cst_15 = arith.constant 2.500000e-01 : f32
    %17 = vector.broadcast %cst_15 : f32 to vector<8x16xf32>
    %18 = arith.mulf %16, %17 : vector<8x16xf32>
    %19 = vector.extract_strided_slice %10 {offsets = [0, 0], sizes = [8, 16], strides = [1, 1]} : vector<8x64xf32> to vector<8x16xf32>
    %20 = vector.extract_strided_slice %15 {offsets = [0, 0], sizes = [8, 16], strides = [1, 1]} : vector<8x64xf32> to vector<8x16xf32>
    %cst_16 = arith.constant dense<0.000000e+00> : vector<8x8xf32>
    %21 = tpu.matmul %18, %19, %cst_16 {dimension_numbers = #tpu.dot_dimension_numbers<[1], [1], [0], [0], [0, 0, 1, 0], [], []>} : vector<8x16xf32>, vector<8x16xf32>, vector<8x8xf32> -> vector<8x8xf32>
    %cst_17 = arith.constant dense<0xFF800000> : vector<8xf32>
    %22 = vector.multi_reduction <maximumf>, %21, %cst_17 [1] : vector<8x8xf32> to vector<8xf32>
    %23 = vector.shape_cast %22 : vector<8xf32> to vector<8x1xf32>
    %24 = vector.broadcast %23 : vector<8x1xf32> to vector<8x8xf32>
    %25 = arith.subf %21, %24 : vector<8x8xf32>
    %26 = math.exp %25 : vector<8x8xf32>
    %cst_18 = arith.constant dense<0.000000e+00> : vector<8xf32>
    %27 = vector.multi_reduction <add>, %26, %cst_18 [1] : vector<8x8xf32> to vector<8xf32>
    %28 = vector.shape_cast %27 : vector<8xf32> to vector<8x1xf32>
    %29 = vector.broadcast %28 : vector<8x1xf32> to vector<8x8xf32>
    %30 = arith.divf %26, %29 : vector<8x8xf32>
    %cst_19 = arith.constant dense<0.000000e+00> : vector<8x16xf32>
    %31 = tpu.matmul %30, %20, %cst_19 {dimension_numbers = #tpu.dot_dimension_numbers<[1], [0], [0], [1], [0, 0, 1, 1], [], []>} : vector<8x8xf32>, vector<8x16xf32>, vector<8x16xf32> -> vector<8x16xf32>
    %32 = vector.extract_strided_slice %5 {offsets = [0, 16], sizes = [8, 16], strides = [1, 1]} : vector<8x64xf32> to vector<8x16xf32>
    %cst_20 = arith.constant 2.500000e-01 : f32
    %33 = vector.broadcast %cst_20 : f32 to vector<8x16xf32>
    %34 = arith.mulf %32, %33 : vector<8x16xf32>
    %35 = vector.extract_strided_slice %10 {offsets = [0, 16], sizes = [8, 16], strides = [1, 1]} : vector<8x64xf32> to vector<8x16xf32>
    %36 = vector.extract_strided_slice %15 {offsets = [0, 16], sizes = [8, 16], strides = [1, 1]} : vector<8x64xf32> to vector<8x16xf32>
    %cst_21 = arith.constant dense<0.000000e+00> : vector<8x8xf32>
    %37 = tpu.matmul %34, %35, %cst_21 {dimension_numbers = #tpu.dot_dimension_numbers<[1], [1], [0], [0], [0, 0, 1, 0], [], []>} : vector<8x16xf32>, vector<8x16xf32>, vector<8x8xf32> -> vector<8x8xf32>
    %cst_22 = arith.constant dense<0xFF800000> : vector<8xf32>
    %38 = vector.multi_reduction <maximumf>, %37, %cst_22 [1] : vector<8x8xf32> to vector<8xf32>
    %39 = vector.shape_cast %38 : vector<8xf32> to vector<8x1xf32>
    %40 = vector.broadcast %39 : vector<8x1xf32> to vector<8x8xf32>
    %41 = arith.subf %37, %40 : vector<8x8xf32>
    %42 = math.exp %41 : vector<8x8xf32>
    %cst_23 = arith.constant dense<0.000000e+00> : vector<8xf32>
    %43 = vector.multi_reduction <add>, %42, %cst_23 [1] : vector<8x8xf32> to vector<8xf32>
    %44 = vector.shape_cast %43 : vector<8xf32> to vector<8x1xf32>
    %45 = vector.broadcast %44 : vector<8x1xf32> to vector<8x8xf32>
    %46 = arith.divf %42, %45 : vector<8x8xf32>
    %cst_24 = arith.constant dense<0.000000e+00> : vector<8x16xf32>
    %47 = tpu.matmul %46, %36, %cst_24 {dimension_numbers = #tpu.dot_dimension_numbers<[1], [0], [0], [1], [0, 0, 1, 1], [], []>} : vector<8x8xf32>, vector<8x16xf32>, vector<8x16xf32> -> vector<8x16xf32>
    %48 = vector.extract_strided_slice %5 {offsets = [0, 32], sizes = [8, 16], strides = [1, 1]} : vector<8x64xf32> to vector<8x16xf32>
    %cst_25 = arith.constant 2.500000e-01 : f32
    %49 = vector.broadcast %cst_25 : f32 to vector<8x16xf32>
    %50 = arith.mulf %48, %49 : vector<8x16xf32>
    %51 = vector.extract_strided_slice %10 {offsets = [0, 32], sizes = [8, 16], strides = [1, 1]} : vector<8x64xf32> to vector<8x16xf32>
    %52 = vector.extract_strided_slice %15 {offsets = [0, 32], sizes = [8, 16], strides = [1, 1]} : vector<8x64xf32> to vector<8x16xf32>
    %cst_26 = arith.constant dense<0.000000e+00> : vector<8x8xf32>
    %53 = tpu.matmul %50, %51, %cst_26 {dimension_numbers = #tpu.dot_dimension_numbers<[1], [1], [0], [0], [0, 0, 1, 0], [], []>} : vector<8x16xf32>, vector<8x16xf32>, vector<8x8xf32> -> vector<8x8xf32>
    %cst_27 = arith.constant dense<0xFF800000> : vector<8xf32>
    %54 = vector.multi_reduction <maximumf>, %53, %cst_27 [1] : vector<8x8xf32> to vector<8xf32>
    %55 = vector.shape_cast %54 : vector<8xf32> to vector<8x1xf32>
    %56 = vector.broadcast %55 : vector<8x1xf32> to vector<8x8xf32>
    %57 = arith.subf %53, %56 : vector<8x8xf32>
    %58 = math.exp %57 : vector<8x8xf32>
    %cst_28 = arith.constant dense<0.000000e+00> : vector<8xf32>
    %59 = vector.multi_reduction <add>, %58, %cst_28 [1] : vector<8x8xf32> to vector<8xf32>
    %60 = vector.shape_cast %59 : vector<8xf32> to vector<8x1xf32>
    %61 = vector.broadcast %60 : vector<8x1xf32> to vector<8x8xf32>
    %62 = arith.divf %58, %61 : vector<8x8xf32>
    %cst_29 = arith.constant dense<0.000000e+00> : vector<8x16xf32>
    %63 = tpu.matmul %62, %52, %cst_29 {dimension_numbers = #tpu.dot_dimension_numbers<[1], [0], [0], [1], [0, 0, 1, 1], [], []>} : vector<8x8xf32>, vector<8x16xf32>, vector<8x16xf32> -> vector<8x16xf32>
    %64 = vector.extract_strided_slice %5 {offsets = [0, 48], sizes = [8, 16], strides = [1, 1]} : vector<8x64xf32> to vector<8x16xf32>
    %cst_30 = arith.constant 2.500000e-01 : f32
    %65 = vector.broadcast %cst_30 : f32 to vector<8x16xf32>
    %66 = arith.mulf %64, %65 : vector<8x16xf32>
    %67 = vector.extract_strided_slice %10 {offsets = [0, 48], sizes = [8, 16], strides = [1, 1]} : vector<8x64xf32> to vector<8x16xf32>
    %68 = vector.extract_strided_slice %15 {offsets = [0, 48], sizes = [8, 16], strides = [1, 1]} : vector<8x64xf32> to vector<8x16xf32>
    %cst_31 = arith.constant dense<0.000000e+00> : vector<8x8xf32>
    %69 = tpu.matmul %66, %67, %cst_31 {dimension_numbers = #tpu.dot_dimension_numbers<[1], [1], [0], [0], [0, 0, 1, 0], [], []>} : vector<8x16xf32>, vector<8x16xf32>, vector<8x8xf32> -> vector<8x8xf32>
    %cst_32 = arith.constant dense<0xFF800000> : vector<8xf32>
    %70 = vector.multi_reduction <maximumf>, %69, %cst_32 [1] : vector<8x8xf32> to vector<8xf32>
    %71 = vector.shape_cast %70 : vector<8xf32> to vector<8x1xf32>
    %72 = vector.broadcast %71 : vector<8x1xf32> to vector<8x8xf32>
    %73 = arith.subf %69, %72 : vector<8x8xf32>
    %74 = math.exp %73 : vector<8x8xf32>
    %cst_33 = arith.constant dense<0.000000e+00> : vector<8xf32>
    %75 = vector.multi_reduction <add>, %74, %cst_33 [1] : vector<8x8xf32> to vector<8xf32>
    %76 = vector.shape_cast %75 : vector<8xf32> to vector<8x1xf32>
    %77 = vector.broadcast %76 : vector<8x1xf32> to vector<8x8xf32>
    %78 = arith.divf %74, %77 : vector<8x8xf32>
    %cst_34 = arith.constant dense<0.000000e+00> : vector<8x16xf32>
    %79 = tpu.matmul %78, %68, %cst_34 {dimension_numbers = #tpu.dot_dimension_numbers<[1], [0], [0], [1], [0, 0, 1, 1], [], []>} : vector<8x8xf32>, vector<8x16xf32>, vector<8x16xf32> -> vector<8x16xf32>
    %80 = tpu.concatenate %31, %47, %63, %79 in 1 : vector<8x16xf32>, vector<8x16xf32>, vector<8x16xf32>, vector<8x16xf32> -> vector<8x64xf32>
    %c0_35 = arith.constant 0 : index
    %c0_36 = arith.constant 0 : index
    %81 = vector.load %arg7[%c0_35, %c0_36] : memref<64x64xf32, #tpu.memory_space<vmem>>, vector<64x64xf32>
    %cst_37 = arith.constant dense<0.000000e+00> : vector<8x64xf32>
    %82 = tpu.matmul %80, %81, %cst_37 {dimension_numbers = #tpu.dot_dimension_numbers<[1], [0], [0], [1], [0, 0, 1, 1], [], []>} : vector<8x64xf32>, vector<64x64xf32>, vector<8x64xf32> -> vector<8x64xf32>
    %c0_38 = arith.constant 0 : index
    %c0_39 = arith.constant 0 : index
    %83 = vector.load %arg8[%c0_38, %c0_39] : memref<1x64xf32, #tpu.memory_space<vmem>>, vector<1x64xf32>
    %84 = vector.broadcast %83 : vector<1x64xf32> to vector<8x64xf32>
    %85 = arith.addf %82, %84 : vector<8x64xf32>
    %86 = arith.addf %0, %85 : vector<8x64xf32>
    %c0_40 = arith.constant 0 : index
    %c0_41 = arith.constant 0 : index
    %87 = vector.load %arg9[%c0_40, %c0_41] : memref<1x64xf32, #tpu.memory_space<vmem>>, vector<1x64xf32>
    %c0_42 = arith.constant 0 : index
    %c0_43 = arith.constant 0 : index
    %88 = vector.load %arg10[%c0_42, %c0_43] : memref<1x64xf32, #tpu.memory_space<vmem>>, vector<1x64xf32>
    %cst_44 = arith.constant dense<0.000000e+00> : vector<8xf32>
    %89 = vector.multi_reduction <add>, %86, %cst_44 [1] : vector<8x64xf32> to vector<8xf32>
    %90 = vector.shape_cast %89 : vector<8xf32> to vector<8x1xf32>
    %cst_45 = arith.constant 6.400000e+01 : f32
    %91 = vector.broadcast %cst_45 : f32 to vector<8x1xf32>
    %92 = arith.divf %90, %91 : vector<8x1xf32>
    %93 = vector.broadcast %92 : vector<8x1xf32> to vector<8x64xf32>
    %94 = arith.subf %86, %93 : vector<8x64xf32>
    %95 = arith.mulf %94, %94 : vector<8x64xf32>
    %cst_46 = arith.constant dense<0.000000e+00> : vector<8xf32>
    %96 = vector.multi_reduction <add>, %95, %cst_46 [1] : vector<8x64xf32> to vector<8xf32>
    %97 = vector.shape_cast %96 : vector<8xf32> to vector<8x1xf32>
    %cst_47 = arith.constant 6.400000e+01 : f32
    %98 = vector.broadcast %cst_47 : f32 to vector<8x1xf32>
    %99 = arith.divf %97, %98 : vector<8x1xf32>
    %100 = vector.broadcast %92 : vector<8x1xf32> to vector<8x64xf32>
    %101 = arith.subf %86, %100 : vector<8x64xf32>
    %cst_48 = arith.constant 9.99999974E-6 : f32
    %102 = vector.broadcast %cst_48 : f32 to vector<8x1xf32>
    %103 = arith.addf %99, %102 : vector<8x1xf32>
    %104 = math.rsqrt %103 : vector<8x1xf32>
    %105 = vector.broadcast %104 : vector<8x1xf32> to vector<8x64xf32>
    %106 = arith.mulf %101, %105 : vector<8x64xf32>
    %107 = vector.broadcast %87 : vector<1x64xf32> to vector<8x64xf32>
    %108 = arith.mulf %106, %107 : vector<8x64xf32>
    %109 = vector.broadcast %88 : vector<1x64xf32> to vector<8x64xf32>
    %110 = arith.addf %108, %109 : vector<8x64xf32>
    %c0_49 = arith.constant 0 : index
    %c0_50 = arith.constant 0 : index
    %111 = vector.load %arg11[%c0_49, %c0_50] : memref<64x128xf32, #tpu.memory_space<vmem>>, vector<64x128xf32>
    %cst_51 = arith.constant dense<0.000000e+00> : vector<8x128xf32>
    %112 = tpu.matmul %110, %111, %cst_51 {dimension_numbers = #tpu.dot_dimension_numbers<[1], [0], [0], [1], [0, 0, 1, 1], [], []>} : vector<8x64xf32>, vector<64x128xf32>, vector<8x128xf32> -> vector<8x128xf32>
    %c0_52 = arith.constant 0 : index
    %c0_53 = arith.constant 0 : index
    %113 = vector.load %arg12[%c0_52, %c0_53] : memref<1x128xf32, #tpu.memory_space<vmem>>, vector<1x128xf32>
    %114 = vector.broadcast %113 : vector<1x128xf32> to vector<8x128xf32>
    %115 = arith.addf %112, %114 : vector<8x128xf32>
    %cst_54 = arith.constant 0.000000e+00 : f32
    %116 = vector.broadcast %cst_54 : f32 to vector<8x128xf32>
    %117 = arith.maximumf %115, %116 : vector<8x128xf32>
    %c0_55 = arith.constant 0 : index
    %c0_56 = arith.constant 0 : index
    %118 = vector.load %arg13[%c0_55, %c0_56] : memref<128x64xf32, #tpu.memory_space<vmem>>, vector<128x64xf32>
    %cst_57 = arith.constant dense<0.000000e+00> : vector<8x64xf32>
    %119 = tpu.matmul %117, %118, %cst_57 {dimension_numbers = #tpu.dot_dimension_numbers<[1], [0], [0], [1], [0, 0, 1, 1], [], []>} : vector<8x128xf32>, vector<128x64xf32>, vector<8x64xf32> -> vector<8x64xf32>
    %c0_58 = arith.constant 0 : index
    %c0_59 = arith.constant 0 : index
    %120 = vector.load %arg14[%c0_58, %c0_59] : memref<1x64xf32, #tpu.memory_space<vmem>>, vector<1x64xf32>
    %121 = vector.broadcast %120 : vector<1x64xf32> to vector<8x64xf32>
    %122 = arith.addf %119, %121 : vector<8x64xf32>
    %cst_60 = arith.constant 0.000000e+00 : f32
    %123 = vector.broadcast %cst_60 : f32 to vector<8x64xf32>
    %124 = arith.maximumf %122, %123 : vector<8x64xf32>
    %c0_61 = arith.constant 0 : index
    %c0_62 = arith.constant 0 : index
    %125 = vector.load %arg15[%c0_61, %c0_62] : memref<64x32xf32, #tpu.memory_space<vmem>>, vector<64x32xf32>
    %cst_63 = arith.constant dense<0.000000e+00> : vector<8x32xf32>
    %126 = tpu.matmul %124, %125, %cst_63 {dimension_numbers = #tpu.dot_dimension_numbers<[1], [0], [0], [1], [0, 0, 1, 1], [], []>} : vector<8x64xf32>, vector<64x32xf32>, vector<8x32xf32> -> vector<8x32xf32>
    %c0_64 = arith.constant 0 : index
    %c0_65 = arith.constant 0 : index
    %127 = vector.load %arg16[%c0_64, %c0_65] : memref<1x32xf32, #tpu.memory_space<vmem>>, vector<1x32xf32>
    %128 = vector.broadcast %127 : vector<1x32xf32> to vector<8x32xf32>
    %129 = arith.addf %126, %128 : vector<8x32xf32>
    %cst_66 = arith.constant 0.000000e+00 : f32
    %130 = vector.broadcast %cst_66 : f32 to vector<8x32xf32>
    %131 = arith.maximumf %129, %130 : vector<8x32xf32>
    %c0_67 = arith.constant 0 : index
    %c0_68 = arith.constant 0 : index
    %132 = vector.load %arg17[%c0_67, %c0_68] : memref<32x128xf32, #tpu.memory_space<vmem>>, vector<32x128xf32>
    %cst_69 = arith.constant dense<0.000000e+00> : vector<8x128xf32>
    %133 = tpu.matmul %131, %132, %cst_69 {dimension_numbers = #tpu.dot_dimension_numbers<[1], [0], [0], [1], [0, 0, 1, 1], [], []>} : vector<8x32xf32>, vector<32x128xf32>, vector<8x128xf32> -> vector<8x128xf32>
    %c0_70 = arith.constant 0 : index
    %c0_71 = arith.constant 0 : index
    %134 = vector.load %arg18[%c0_70, %c0_71] : memref<1x128xf32, #tpu.memory_space<vmem>>, vector<1x128xf32>
    %135 = vector.broadcast %134 : vector<1x128xf32> to vector<8x128xf32>
    %136 = arith.addf %133, %135 : vector<8x128xf32>
    %c0_72 = arith.constant 0 : index
    %c0_73 = arith.constant 0 : index
    %137 = vector.load %arg19[%c0_72, %c0_73] : memref<8x128xf32, #tpu.memory_space<vmem>>, vector<8x128xf32>
    tpu.vector_store %arg19[%c0_72, %c0_73], %136 {strides = array<i32>} : memref<8x128xf32, #tpu.memory_space<vmem>>, vector<8x128xf32>,
    return
  }
}

</mosaic_0001>

<bundles_post_ra>
// kernel: tpu_custom_call.1
= control target key start
LH: loop header
LB: loop body
LE: loop exit
PB: predicated region body
PF: predicated region fallthrough
CT: control target
= control target key end

     0   :  { %s2969_s0 = inlined_call_operand.hbm [shape: f32[8,64], index: 0, kind: input, shape index: {}]   ;;  %s2970_s1 = inlined_call_operand.vmem [shape: f32[64,64], index: 1, kind: input, shape index: {}]   ;;  %s2971_s2 = inlined_call_operand.vmem [shape: f32[64,64], index: 2, kind: input, shape index: {}]   ;;  %s2972_s3 = inlined_call_operand.vmem [shape: f32[64,64], index: 3, kind: input, shape index: {}]   ;;  %s2973_s4 = inlined_call_operand.hbm [shape: f32[1,64], index: 4, kind: input, shape index: {}]   ;;  %s2974_s5 = inlined_call_operand.hbm [shape: f32[1,64], index: 5, kind: input, shape index: {}]   ;;  %s2975_s6 = inlined_call_operand.hbm [shape: f32[1,64], index: 6, kind: input, shape index: {}]   ;;  %s2976_s7 = inlined_call_operand.hbm [shape: f32[64,64], index: 7, kind: input, shape index: {}]   ;;  %s2977_s8 = inlined_call_operand.hbm [shape: f32[1,64], index: 8, kind: input, shape index: {}]   ;;  %s2978_s9 = inlined_call_operand.hbm [shape: f32[1,64], index: 9, kind: input, shape index: {}]   ;;  %s2979_s10 = inlined_call_operand.hbm [shape: f32[1,64], index: 10, kind: input, shape index: {}]   ;;  %s2980_s11 = inlined_call_operand.vmem [shape: f32[64,128], index: 11, kind: input, shape index: {}]   ;;  %s2981_s12 = inlined_call_operand.hbm [shape: f32[1,128], index: 12, kind: input, shape index: {}]   ;;  %s2982_s13 = inlined_call_operand.vmem [shape: f32[128,64], index: 13, kind: input, shape index: {}]   ;;  %s2983_s14 = inlined_call_operand.hbm [shape: f32[1,64], index: 14, kind: input, shape index: {}]   ;;  %s2984_s15 = inlined_call_operand.vmem [shape: f32[64,32], index: 15, kind: input, shape index: {}]   ;;  %s2985_s16 = inlined_call_operand.hbm [shape: f32[1,32], index: 16, kind: input, shape index: {}]   ;;  %s2986_s17 = inlined_call_operand.vmem [shape: f32[32,128], index: 17, kind: input, shape index: {}]   ;;  %s2987_s18 = inlined_call_operand.vmem [shape: f32[1,128], index: 18, kind: input, shape index: {}]   ;;  %s2988_s19 = inlined_call_operand.hbm [shape: f32[8,128], index: 19, kind: output, shape index: {}]  }
   0x1   :  { %2993 = sst [smem:[#allocation28_spill]] %s2969_s0 }
   0x2   :  { %2994 = sst [smem:[#allocation29_spill]] %s2970_s1 }
   0x3   :  { %2995 = sst [smem:[#allocation30_spill]] %s2971_s2 }
   0x4   :  { %2996 = sst [smem:[#allocation31_spill]] %s2972_s3 }
   0x5   :  { %24 = vsyncpa [#allocation3], 0 }
   0x6   :  { %25 = vsyncpa [#allocation6], 0 }
   0x7   :  { %26 = vsyncpa [#allocation9], 0 }
   0x8   :  { %27 = vsyncpa [#allocation12], 0 }
   0x9   :  { %28 = vsyncpa [#allocation15], 0 }
   0xa   :  { %29 = vsyncpa [#allocation18], 0 }
   0xb   :  { %30 = vsyncpa [#allocation4], 0  ;;  %s2366_s0 = smov [#allocation5]   ;;  %s2367_s20 = smov [#allocation8]  }
   0xc   :  { %s53_s30 = sshll.u32 %s2366_s0, 4  ;;  %s73_s21 = sshll.u32 %s2367_s20, 4  ;;  %s54_s30 = int_to_ptr.vmem [resolvable:$true] %s53_s30  ;;  %s74_s21 = int_to_ptr.vmem [resolvable:$true] %s73_s21 }
   0xd   :  { %s2088_s2 = scalar_lea.hbm %s2973_s4, 16 }
   0xe   :  { %p2089_p0 = scmp.ne.s32.totalorder %s2973_s4, %s2088_s2  ;;  %p2092_p1 = scmp.lt.u32.totalorder %s2088_s2, %s2973_s4 }
  0x10   :  { %p2094_p2 = pnand %p2092_p1, %p2089_p0 }
  0x12   :  { %2097 = shalt.err (!%p2094_p2)
}
  0x13   :  { %s2098_s26 = scalar_lea.vmem %s54_s30, 16  ;;  %s2102_s27 = scalar_lea.vmem %s54_s30, 32 }
  0x14   :  { %p2099_p3 = scmp.ne.s32.totalorder %s54_s30, %s2098_s26  ;;  %p2103_p4 = scmp.lt.s32.totalorder %s54_s30, %s54_s30 }
  0x15   :  { %p2104_p5 = scmp.lt.s32.totalorder %s2102_s27, %s2098_s26 }
  0x17   :  { %p2105_p6 = por %p2104_p5, %p2103_p4 }
  0x19   :  { %p2106_p7 = pnand %p2105_p6, %p2099_p3 }
  0x1b   :  { %2109 = shalt.err (!%p2106_p7)
}
  0x1c   :  { %56 = dma.hbm_to_vmem [thread:$0]  %s2973_s4, 16, %s54_s30, [#allocation6]  }
  0x1d   :  { %s2110_s1 = scalar_lea.hbm %s2975_s6, 16 }
  0x1e   :  { %p2111_p8 = scmp.ne.s32.totalorder %s2975_s6, %s2110_s1  ;;  %p2114_p9 = scmp.lt.u32.totalorder %s2110_s1, %s2975_s6 }
  0x20   :  { %p2116_p10 = pnand %p2114_p9, %p2111_p8 }
  0x22   :  { %2119 = shalt.err (!%p2116_p10)
}
  0x23   :  { %s2120_s25 = scalar_lea.vmem %s74_s21, 16  ;;  %s2124_s3 = scalar_lea.vmem %s74_s21, 32 }
  0x24   :  { %p2121_p11 = scmp.ne.s32.totalorder %s74_s21, %s2120_s25  ;;  %p2125_p12 = scmp.lt.s32.totalorder %s74_s21, %s74_s21 }
  0x25   :  { %p2126_p13 = scmp.lt.s32.totalorder %s2124_s3, %s2120_s25 }
  0x27   :  { %p2127_p0 = por %p2126_p13, %p2125_p12 }
  0x29   :  { %p2128_p1 = pnand %p2127_p0, %p2121_p11 }
  0x2b   :  { %2131 = shalt.err (!%p2128_p1)
}
  0x2c   :  { %76 = dma.hbm_to_vmem [thread:$0]  %s2975_s6, 16, %s74_s21, [#allocation9]  }
  0x2d   :  { %s2368_s26 = smov [#allocation11]   ;;  %s2369_s28 = smov [#allocation14]  }
  0x2e   :  { %s95_s27 = sshll.u32 %s2368_s26, 4  ;;  %s115_s29 = sshll.u32 %s2369_s28, 4  ;;  %s96_s27 = int_to_ptr.vmem [resolvable:$true] %s95_s27  ;;  %s116_s29 = int_to_ptr.vmem [resolvable:$true] %s115_s29 }
  0x2f   :  { %s2132_s1 = scalar_lea.hbm %s2977_s8, 16 }
  0x30   :  { %p2133_p2 = scmp.ne.s32.totalorder %s2977_s8, %s2132_s1  ;;  %p2136_p3 = scmp.lt.u32.totalorder %s2132_s1, %s2977_s8 }
  0x32   :  { %p2138_p4 = pnand %p2136_p3, %p2133_p2 }
  0x34   :  { %2141 = shalt.err (!%p2138_p4)
}
  0x35   :  { %s2142_s6 = scalar_lea.vmem %s96_s27, 16  ;;  %s2146_s21 = scalar_lea.vmem %s96_s27, 32 }
  0x36   :  { %p2143_p5 = scmp.ne.s32.totalorder %s96_s27, %s2142_s6  ;;  %p2147_p6 = scmp.lt.s32.totalorder %s96_s27, %s96_s27 }
  0x37   :  { %p2148_p7 = scmp.lt.s32.totalorder %s2146_s21, %s2142_s6 }
  0x39   :  { %p2149_p8 = por %p2148_p7, %p2147_p6 }
  0x3b   :  { %p2150_p9 = pnand %p2149_p8, %p2143_p5 }
  0x3d   :  { %2153 = shalt.err (!%p2150_p9)
}
  0x3e   :  { %98 = dma.hbm_to_vmem [thread:$0]  %s2977_s8, 16, %s96_s27, [#allocation12]  }
  0x3f   :  { %s2154_s26 = scalar_lea.hbm %s2979_s10, 16 }
  0x40   :  { %p2155_p10 = scmp.ne.s32.totalorder %s2979_s10, %s2154_s26  ;;  %p2158_p11 = scmp.lt.u32.totalorder %s2154_s26, %s2979_s10 }
  0x42   :  { %p2160_p12 = pnand %p2158_p11, %p2155_p10 }
  0x44   :  { %2163 = shalt.err (!%p2160_p12)
}
  0x45   :  { %s2164_s22 = scalar_lea.vmem %s116_s29, 16  ;;  %s2168_s2 = scalar_lea.vmem %s116_s29, 32 }
  0x46   :  { %p2165_p13 = scmp.ne.s32.totalorder %s116_s29, %s2164_s22  ;;  %p2169_p0 = scmp.lt.s32.totalorder %s116_s29, %s116_s29 }
  0x47   :  { %p2170_p1 = scmp.lt.s32.totalorder %s2168_s2, %s2164_s22 }
  0x49   :  { %p2171_p2 = por %p2170_p1, %p2169_p0 }
  0x4b   :  { %p2172_p3 = pnand %p2171_p2, %p2165_p13 }
  0x4d   :  { %2175 = shalt.err (!%p2172_p3)
}
  0x4e   :  { %118 = dma.hbm_to_vmem [thread:$0]  %s2979_s10, 16, %s116_s29, [#allocation15]  }
  0x4f   :  { %s2370_s23 = smov [#allocation17]   ;;  %s2371_s6 = smov [#allocation2]  }
  0x50   :  { %s139_s24 = sshll.u32 %s2370_s23, 4  ;;  %s37_s21 = sshll.u32 %s2371_s6, 4  ;;  %s140_s24 = int_to_ptr.vmem [resolvable:$true] %s139_s24  ;;  %s38_s21 = int_to_ptr.vmem [resolvable:$true] %s37_s21 }
  0x51   :  { %s2176_s4 = scalar_lea.hbm %s2983_s14, 16 }
  0x52   :  { %p2177_p4 = scmp.ne.s32.totalorder %s2983_s14, %s2176_s4  ;;  %p2180_p5 = scmp.lt.u32.totalorder %s2176_s4, %s2983_s14 }
  0x54   :  { %p2182_p6 = pnand %p2180_p5, %p2177_p4 }
  0x56   :  { %2185 = shalt.err (!%p2182_p6)
}
  0x57   :  { %s2186_s10 = scalar_lea.vmem %s140_s24, 16  ;;  %s2190_s29 = scalar_lea.vmem %s140_s24, 32 }
  0x58   :  { %p2187_p7 = scmp.ne.s32.totalorder %s140_s24, %s2186_s10  ;;  %p2191_p8 = scmp.lt.s32.totalorder %s140_s24, %s140_s24 }
  0x59   :  { %p2192_p9 = scmp.lt.s32.totalorder %s2190_s29, %s2186_s10 }
  0x5b   :  { %p2193_p10 = por %p2192_p9, %p2191_p8 }
  0x5d   :  { %p2194_p11 = pnand %p2193_p10, %p2187_p7 }
  0x5f   :  { %2197 = shalt.err (!%p2194_p11)
}
  0x60   :  { %142 = dma.hbm_to_vmem [thread:$0]  %s2983_s14, 16, %s140_s24, [#allocation18]  }
  0x61   :  { %s2997_s8 = sld [smem:[#allocation28_spill]] }
  0x67   :  { %s2198_s27 = scalar_lea.hbm %s2997_s8, 128 }
  0x68   :  { %p2199_p12 = scmp.ne.s32.totalorder %s2997_s8, %s2198_s27  ;;  %p2202_p13 = scmp.lt.u32.totalorder %s2198_s27, %s2997_s8 }
  0x6a   :  { %p2204_p0 = pnand %p2202_p13, %p2199_p12 }
  0x6c   :  { %2207 = shalt.err (!%p2204_p0)
}
  0x6d   :  { %s2208_s4 = scalar_lea.vmem %s38_s21, 128  ;;  %p2213_p2 = scmp.lt.s32.totalorder %s38_s21, %s38_s21 }
  0x6e   :  { %p2209_p1 = scmp.ne.s32.totalorder %s38_s21, %s2208_s4  ;;  %p2214_p3 = scmp.lt.s32.totalorder %s2208_s4, %s2208_s4 }
  0x70   :  { %p2215_p4 = por %p2214_p3, %p2213_p2 }
  0x72   :  { %p2216_p5 = pnand %p2215_p4, %p2209_p1 }
  0x74   :  { %2219 = shalt.err (!%p2216_p5)
}
  0x75   :  { %40 = dma.hbm_to_vmem [thread:$0]  %s2997_s8, 128, %s38_s21, [#allocation3]  }
  0x76   :  { %s2372_s30 = smov [#allocation7]   ;;  %s2373_s28 = smov [#allocation10]  }
  0x77   :  { %s63_s26 = sshll.u32 %s2372_s30, 4  ;;  %s82_s0 = sshll.u32 %s2373_s28, 4  ;;  %s64_s26 = int_to_ptr.vmem [resolvable:$true] %s63_s26  ;;  %s2561_s0 = int_to_ptr.vmem [resolvable:$true] %s82_s0 }
  0x78   :  { %s2220_s20 = scalar_lea.hbm %s2974_s5, 16 }
  0x79   :  { %p2221_p6 = scmp.ne.s32.totalorder %s2974_s5, %s2220_s20  ;;  %p2224_p7 = scmp.lt.u32.totalorder %s2220_s20, %s2974_s5 }
  0x7b   :  { %p2226_p8 = pnand %p2224_p7, %p2221_p6 }
  0x7d   :  { %2229 = shalt.err (!%p2226_p8)
}
  0x7e   :  { %s2230_s21 = scalar_lea.vmem %s64_s26, 16  ;;  %s2234_s8 = scalar_lea.vmem %s64_s26, 32 }
  0x7f   :  { %p2231_p9 = scmp.ne.s32.totalorder %s64_s26, %s2230_s21  ;;  %p2235_p10 = scmp.lt.s32.totalorder %s64_s26, %s64_s26 }
  0x80   :  { %p2236_p11 = scmp.lt.s32.totalorder %s2234_s8, %s2230_s21 }
  0x82   :  { %p2237_p12 = por %p2236_p11, %p2235_p10 }
  0x84   :  { %p2238_p13 = pnand %p2237_p12, %p2231_p9 }
  0x86   :  { %2241 = shalt.err (!%p2238_p13)
}
  0x87   :  { %66 = dma.hbm_to_vmem [thread:$0]  %s2974_s5, 16, %s64_s26, [#allocation6]  }
  0x88   :  { %s2242_s4 = scalar_lea.hbm %s2976_s7, 1024 }
  0x89   :  { %p2243_p0 = scmp.ne.s32.totalorder %s2976_s7, %s2242_s4  ;;  %p2246_p1 = scmp.lt.u32.totalorder %s2242_s4, %s2976_s7 }
  0x8b   :  { %p2248_p2 = pnand %p2246_p1, %p2243_p0 }
  0x8d   :  { %2251 = shalt.err (!%p2248_p2)
}
  0x8e   :  { %s2252_s10 = scalar_lea.vmem %s2561_s0, 1024  ;;  %p2257_p4 = scmp.lt.s32.totalorder %s2561_s0, %s2561_s0 }
  0x8f   :  { %p2253_p3 = scmp.ne.s32.totalorder %s2561_s0, %s2252_s10  ;;  %p2258_p5 = scmp.lt.s32.totalorder %s2252_s10, %s2252_s10 }
  0x91   :  { %p2259_p6 = por %p2258_p5, %p2257_p4 }
  0x93   :  { %p2260_p7 = pnand %p2259_p6, %p2253_p3 }
  0x95   :  { %2263 = shalt.err (!%p2260_p7)
}
  0x96   :  { %s2374_s5 = smov 128   ;;  %s2375_s26 = smov 8  }
  0x97   :  { %88 = dma.hbm_to_vmem [thread:$0]  %s2976_s7, 1024, %s2561_s0, [#allocation9], %s2374_s5, %s2374_s5, %s2375_s26  }
  0x98   :  { %s2376_s1 = smov [#allocation13]   ;;  %s2377_s2 = smov [#allocation16]  }
  0x99   :  { %s105_s22 = sshll.u32 %s2376_s1, 4  ;;  %s127_s27 = sshll.u32 %s2377_s2, 4  ;;  %s106_s22 = int_to_ptr.vmem [resolvable:$true] %s105_s22  ;;  %s128_s27 = int_to_ptr.vmem [resolvable:$true] %s127_s27 }
  0x9a   :  { %s2264_s23 = scalar_lea.hbm %s2978_s9, 16 }
  0x9b   :  { %p2265_p8 = scmp.ne.s32.totalorder %s2978_s9, %s2264_s23  ;;  %p2268_p9 = scmp.lt.u32.totalorder %s2264_s23, %s2978_s9 }
  0x9d   :  { %p2270_p10 = pnand %p2268_p9, %p2265_p8 }
  0x9f   :  { %2273 = shalt.err (!%p2270_p10)
}
  0xa0   :  { %s2274_s7 = scalar_lea.vmem %s106_s22, 16  ;;  %s2278_s0 = scalar_lea.vmem %s106_s22, 32 }
  0xa1   :  { %p2275_p11 = scmp.ne.s32.totalorder %s106_s22, %s2274_s7  ;;  %p2279_p12 = scmp.lt.s32.totalorder %s106_s22, %s106_s22 }
  0xa2   :  { %p2280_p13 = scmp.lt.s32.totalorder %s2278_s0, %s2274_s7 }
  0xa4   :  { %p2281_p0 = por %p2280_p13, %p2279_p12 }
  0xa6   :  { %p2282_p1 = pnand %p2281_p0, %p2275_p11 }
  0xa8   :  { %2285 = shalt.err (!%p2282_p1)
}
  0xa9   :  { %108 = dma.hbm_to_vmem [thread:$0]  %s2978_s9, 16, %s106_s22, [#allocation12]  }
  0xaa   :  { %s2286_s10 = scalar_lea.hbm %s2981_s12, 16 }
  0xab   :  { %p2287_p2 = scmp.ne.s32.totalorder %s2981_s12, %s2286_s10  ;;  %p2290_p3 = scmp.lt.u32.totalorder %s2286_s10, %s2981_s12 }
  0xad   :  { %p2292_p4 = pnand %p2290_p3, %p2287_p2 }
  0xaf   :  { %2295 = shalt.err (!%p2292_p4)
}
  0xb0   :  { %s2296_s1 = scalar_lea.vmem %s128_s27, 16  ;;  %s2300_s2 = scalar_lea.vmem %s128_s27, 32 }
  0xb1   :  { %p2297_p5 = scmp.ne.s32.totalorder %s128_s27, %s2296_s1  ;;  %p2301_p6 = scmp.lt.s32.totalorder %s128_s27, %s128_s27 }
  0xb2   :  { %p2302_p7 = scmp.lt.s32.totalorder %s2300_s2, %s2296_s1 }
  0xb4   :  { %p2303_p8 = por %p2302_p7, %p2301_p6 }
  0xb6   :  { %p2304_p9 = pnand %p2303_p8, %p2297_p5 }
  0xb8   :  { %2307 = shalt.err (!%p2304_p9)
}
  0xb9   :  { %130 = dma.hbm_to_vmem [thread:$0]  %s2981_s12, 16, %s128_s27, [#allocation15]  }
  0xba   :  { %s2378_s21 = smov [#allocation19]   ;;  %s2308_s25 = scalar_lea.hbm %s2985_s16, 16 }
  0xbb   :  { %s151_s8 = sshll.u32 %s2378_s21, 4  ;;  %p2309_p10 = scmp.ne.s32.totalorder %s2985_s16, %s2308_s25  ;;  %s152_s8 = int_to_ptr.vmem [resolvable:$true] %s151_s8 }
  0xbc   :  { %p2312_p11 = scmp.lt.u32.totalorder %s2308_s25, %s2985_s16 }
  0xbe   :  { %p2314_p12 = pnand %p2312_p11, %p2309_p10 }
  0xc0   :  { %2317 = shalt.err (!%p2314_p12)
}
  0xc1   :  { %s2318_s14 = scalar_lea.vmem %s152_s8, 16  ;;  %s2322_s12 = scalar_lea.vmem %s152_s8, 32 }
  0xc2   :  { %p2319_p13 = scmp.ne.s32.totalorder %s152_s8, %s2318_s14  ;;  %p2323_p0 = scmp.lt.s32.totalorder %s152_s8, %s152_s8 }
  0xc3   :  { %p2324_p1 = scmp.lt.s32.totalorder %s2322_s12, %s2318_s14 }
  0xc5   :  { %p2325_p2 = por %p2324_p1, %p2323_p0 }
  0xc7   :  { %p2326_p3 = pnand %p2325_p2, %p2319_p13 }
  0xc9   :  { %2329 = shalt.err (!%p2326_p3)
}
  0xca   :  { %154 = dma.hbm_to_vmem [thread:$0]  %s2985_s16, 16, %s152_s8, [#allocation18]  }
  0xcb   :  { %2352 = dma.done.wait [#allocation3], 128  }
  0xcc   :  { %2353 = vsyncadd [#allocation3], 4294967168 }
  0xcd   :  { %2354 = dma.done.wait [#allocation6], 32  }
  0xce   :  { %2355 = vsyncadd [#allocation6], 4294967264 }
  0xcf   :  { %2356 = dma.done.wait [#allocation9], 1040  }
  0xd0   :  { %2357 = vsyncadd [#allocation9], 4294966256 }
  0xd1   :  { %2358 = dma.done.wait [#allocation12], 32  }
  0xd2   :  { %2359 = vsyncadd [#allocation12], 4294967264 }
  0xd3   :  { %2360 = dma.done.wait [#allocation15], 32  }
  0xd4   :  { %2361 = vsyncadd [#allocation15], 4294967264 }
  0xd5   :  { %2362 = dma.done.wait [#allocation18], 32  }
  0xd6   :  { %2363 = vsyncadd [#allocation18], 4294967264  ;;  %v2379_v0 = vmov 0.0|0.0   ;;  %vm2380_vm0 = vmmov 0   ;;  %v2381_v1 = vmov 0.0   ;;  %s2998_s28 = sld [smem:[#allocation30_spill]] }
  0xd7   :  { %1957 = vmatprep.subr.bf16.mxu1 %v2379_v0  ;;  %1945 = vmatprep.subr.bf16.mxu0 %v2379_v0  ;;  %s2999_s20 = sld [smem:[#allocation29_spill]]  ;;  %v2688_v26 = vld [vmem:[#allocation2] sm:$0xff]  ;;  %vm208_vm1 = vcmask 523264   ;;  %v1626_v27 = vld [vmem:[#allocation7] ss:$0 sm:$0xff]  ;;  %vm453_vm2 = vcmask 130048  }
  0xd8   :  { %1780 = vmatprep.mubr.msk.f32.mxu1 %vm2380_vm0, %v2381_v1  ;;  %1761 = vmatprep.mubr.msk.f32.mxu0 %vm2380_vm0, %v2381_v1  ;;  %v1624_v28 = vld [vmem:[#allocation5] ss:$0 sm:$0xff]  ;;  %s3000_s21 = sld [smem:[#allocation31_spill]]  ;;  %vm530_vm3 = vcmask 64512   ;;  %v1628_v56 = vld [vmem:[#allocation8] ss:$0 sm:$0xff] }
  0xd9   :  { %s2383_s10 = smov 96   ;;  %s2384_s5 = smov 80   ;;  %vm1124_vm4 = vcmask 261120   ;;  %vm1126_vm5 = vcmask 392192  }
  0xda   :  { %s2385_s26 = smov 16   ;;  %s2386_s29 = smov 32  }
  0xdb   :  { %s2387_s1 = smov 48  }
  0xdc   :  { %v282_v2 = vld [vmem:[%s2998_s28] sm:$0xff]  ;;  %v283_v3 = vld [vmem:[%s2998_s28 + $0x8] sm:$0xff]  ;;  %v284_v7 = vld [vmem:[%s2998_s28 + $0x10] sm:$0xff] }
  0xdd   :  { %v193_v4 = vld [vmem:[%s2999_s20] sm:$0xff]  ;;  %v1958_v5 = vpack.c.bf16 %v283_v3, %v282_v2  ;;  %v194_v6 = vld [vmem:[%s2999_s20 + $0x8] sm:$0xff]  ;;  %v285_v8 = vld [vmem:[%s2998_s28 + $0x18] sm:$0xff] }
  0xde   :  { %v1946_v9 = vpack.c.bf16 %v194_v6, %v193_v4  ;;  %v195_v10 = vld [vmem:[%s2999_s20 + $0x10] sm:$0xff]  ;;  %v196_v11 = vld [vmem:[%s2999_s20 + $0x18] sm:$0xff]  ;;  %v1961_v12 = vpack.c.bf16 %v285_v8, %v284_v7  ;;  %v286_v14 = vld [vmem:[%s2998_s28 + $0x20] sm:$0xff] }
  0xdf   :  { %1959 = vmatpush3.bf16.msra.mxu1 %v1958_v5  ;;  %v1949_v13 = vpack.c.bf16 %v196_v11, %v195_v10  ;;  %v287_v15 = vld [vmem:[%s2998_s28 + $0x28] sm:$0xff]  ;;  %v197_v16 = vld [vmem:[%s2999_s20 + $0x20] sm:$0xff]  ;;  %v288_v20 = vld [vmem:[%s2998_s28 + $0x30] sm:$0xff] }
  0xe0   :  { %1947 = vmatpush3.bf16.msra.mxu0 %v1946_v9  ;;  %1960 = vmatprep.subr.bf16.mxu1 %v2379_v0  ;;  %v198_v17 = vld [vmem:[%s2999_s20 + $0x28] sm:$0xff]  ;;  %v1964_v18 = vpack.c.bf16 %v287_v15, %v286_v14  ;;  %v289_v21 = vld [vmem:[%s2998_s28 + $0x38] sm:$0xff]  ;;  %v199_v22 = vld [vmem:[%s2999_s20 + $0x30] sm:$0xff]  ;;  %s2382_s28 = smov 112  }
  0xe1   :  { %1948 = vmatprep.subr.bf16.mxu0 %v2379_v0  ;;  %v1952_v19 = vpack.c.bf16 %v198_v17, %v197_v16  ;;  %v200_v23 = vld [vmem:[%s2999_s20 + $0x38] sm:$0xff]  ;;  %v1967_v24 = vpack.c.bf16 %v289_v21, %v288_v20  ;;  %v367_v36 = vld [vmem:[%s3000_s21] sm:$0xff]  ;;  %v368_v37 = vld [vmem:[%s3000_s21 + $0x8] sm:$0xff] }
  0xe2   :  { %v1955_v25 = vpack.c.bf16 %v200_v23, %v199_v22  ;;  %v369_v38 = vld [vmem:[%s3000_s21 + $0x10] sm:$0xff]  ;;  %v1970_v39 = vpack.c.bf16 %v368_v37, %v367_v36  ;;  %v370_v40 = vld [vmem:[%s3000_s21 + $0x18] sm:$0xff]  ;;  %v371_v42 = vld [vmem:[%s3000_s21 + $0x20] sm:$0xff] }
  0xe3   :  { %1962 = vmatpush3.bf16.msra.mxu1 %v1961_v12  ;;  %v1973_v41 = vpack.c.bf16 %v370_v40, %v369_v38  ;;  %v372_v43 = vld [vmem:[%s3000_s21 + $0x28] sm:$0xff]  ;;  %v373_v45 = vld [vmem:[%s3000_s21 + $0x30] sm:$0xff]  ;;  %v374_v46 = vld [vmem:[%s3000_s21 + $0x38] sm:$0xff] }
  0xe4   :  { %1950 = vmatpush3.bf16.msra.mxu0 %v1949_v13  ;;  %1963 = vmatprep.subr.bf16.mxu1 %v2379_v0  ;;  %v1976_v44 = vpack.c.bf16 %v372_v43, %v371_v42  ;;  %v1979_v47 = vpack.c.bf16 %v374_v46, %v373_v45 }
  0xe5   :  { %1951 = vmatprep.subr.bf16.mxu0 %v2379_v0 }
  0xe7   :  { %1965 = vmatpush3.bf16.msra.mxu1 %v1964_v18 }
  0xe8   :  { %1953 = vmatpush3.bf16.msra.mxu0 %v1952_v19  ;;  %1966 = vmatprep.subr.bf16.mxu1 %v2379_v0 }
  0xe9   :  { %1954 = vmatprep.subr.bf16.mxu0 %v2379_v0 }
  0xeb   :  { %1968 = vmatpush3.bf16.msra.mxu1 %v1967_v24 }
  0xec   :  { %1956 = vmatpush3.bf16.msra.mxu0 %v1955_v25  ;;  %1802 = vmatprep.subr.mxu1 %v2381_v1 }
  0xed   :  { %1969 = vmatprep.subr.bf16.mxu0 %v2379_v0 }
  0xee   :  { %1781 = vmatmul.mubr.msk.f32.vlgmr.msra.gmra.mrb[0].mxu1 %vm208_vm1, %v2688_v26 }
  0xef   :  { %1762 = vmatmul.mubr.msk.f32.vlgmr.msra.gmra.mrb[0].mxu0 %vm208_vm1, %v2688_v26  ;;  %1804 = vmatprep.mubr.msk.f32.mxu1 %vm2380_vm0, %v2381_v1 }
  0xf0   :  { %1799 = vmatprep.mubr.msk.f32.mxu0 %vm2380_vm0, %v2381_v1  ;;  %1971 = vmatpush3.bf16.msra.mxu0 %v1970_v39 }
  0xf1   :  { %1972 = vmatprep.subr.bf16.mxu0 %v2379_v0 }
  0xf4   :  { %1974 = vmatpush3.bf16.msra.mxu0 %v1973_v41 }
  0xf5   :  { %1975 = vmatprep.subr.bf16.mxu0 %v2379_v0 }
  0xf8   :  { %1977 = vmatpush3.bf16.msra.mxu0 %v1976_v44 }
  0xf9   :  { %1978 = vmatprep.subr.bf16.mxu0 %v2379_v0 }
  0xfc   :  { %1980 = vmatpush3.bf16.msra.mxu0 %v1979_v47 }
  0xfd   :  { %1832 = vmatprep.subr.mxu0 %v2381_v1 }
  0xff   :  { %1800 = vmatmul.mubr.msk.f32.vlgmr.msra.gmra.mrb[2].mxu0 %vm208_vm1, %v2688_v26 }
 0x100   :  { %1834 = vmatprep.mubr.msk.f32.mxu0 %vm2380_vm0, %v2381_v1 }
 0x1c1   :  { %v363_v29 = vpop.f32.mrb[0].mxu1 }
 0x1c2   :  { %v2700_v30 = vadd.f32 %v1626_v27, %v363_v29  ;;  %v278_v31 = vpop.f32.mrb[0].mxu0  ;;  %v1782_v32 = vpop.f32.mrb[1].mxu1 }
 0x1c3   :  { %v279_v33 = vadd.f32 %v1624_v28, %v278_v31  ;;  %v1763_v34 = vpop.f32.mrb[1].mxu0 }
 0x1c4   :  { %617 = vrot.lane.b32.xlu1 %v2700_v30, %s2382_s28  ;;  %1803 = vmatpush3.xpose.msk.msra.mxu1 %vm453_vm2, %v2700_v30 }
 0x1c5   :  { %v2706_v35 = vmul.f32 0.25, %v279_v33  ;;  %1807 = vmatprep.subr.mxu1 %v2381_v1 }
 0x1c7   :  { %1805 = vmatmul.mubr.msk.f32.vlgmr.msra.gmra.mrb[2].mxu1 %vm453_vm2, %v2706_v35 }
 0x1c8   :  { %615 = vrot.lane.b32.xlu1 %v2706_v35, %s2382_s28  ;;  %1809 = vmatprep.mubr.msk.f32.mxu1 %vm2380_vm0, %v2381_v1 }
 0x1d2   :  { %v448_v57 = vpop.f32.mrb[2].mxu0 }
 0x1d3   :  { %v2749_v58 = vadd.f32 %v1628_v56, %v448_v57  ;;  %v1801_v59 = vpop.f32.mrb[3].mxu0  ;;  %v1134_v57 = vld [vmem:[#allocation10 + $0x30] sm:$0xff] }
 0x1d5   :  { %1808 = vmatpush3.msra.mxu1 %v2749_v58 }
 0x1d6   :  { %1812 = vmatprep.subr.mxu1 %v2381_v1 }
 0x236   :  { %v618_v62 = vpop.permute.xlu1 %617 }
 0x23a   :  { %v616_v2 = vpop.permute.xlu1 %615 }
 0x29a   :  { %v526_v48 = vpop.f32.mrb[2].mxu1 }
 0x29b   :  { %v1806_v49 = vpop.f32.mrb[3].mxu1  ;;  %v531_v50 = vsel %vm530_vm3, %v526_v48, -inf }
 0x29c   :  { %532 = vmax.xlane.f32.xlu0 %v531_v50  ;;  %v1129_v49 = vld [vmem:[#allocation10 + $0x8] sm:$0xff]  ;;  %v1130_v50 = vld [vmem:[#allocation10 + $0x10] sm:$0xff] }
 0x329   :  { %v533_v51 = vpop.xlane.xlu0 %532 }
 0x32a   :  { %v534_v52 = vsub.f32 %v526_v48, %v533_v51  ;;  %v1128_v48 = vld [vmem:[#allocation10] sm:$0xff] }
 0x32b   :  { %v1982_v51 = vpack.c.bf16 %v1129_v49, %v1128_v48  ;;  %v1348_v49 = vld [vmem:[%s2982_s13 + $0x60] sm:$0xff] }
 0x32c   :  { %v535_v53 = vmul.f32 1.442695, %v534_v52  ;;  %v1131_v52 = vld [vmem:[#allocation10 + $0x18] sm:$0xff] }
 0x32e   :  { %2070 = vpow2.f32 %v535_v53  ;;  %v1985_v53 = vpack.c.bf16 %v1131_v52, %v1130_v50  ;;  %v1349_v50 = vld [vmem:[%s2982_s13 + $0x68] sm:$0xff] }
 0x338   :  { %v2071_v54 = vpop.eup %2070 }
 0x339   :  { %v537_v55 = vsel %vm530_vm3, %v2071_v54, 0.0 }
 0x33a   :  { %538 = vadd.xlane.f32.xlu0 %v537_v55  ;;  %v1133_v55 = vld [vmem:[#allocation10 + $0x28] sm:$0xff] }
 0x3c7   :  { %v539_v60 = vpop.xlane.xlu0 %538 }
 0x3c8   :  { %2072 = vrcp.f32 %v539_v60 }
 0x3d2   :  { %v2073_v61 = vpop.eup %2072 }
 0x3d3   :  { %v541_v63 = vmul.f32 %v2073_v61, %v2071_v54  ;;  %v1132_v54 = vld [vmem:[#allocation10 + $0x20] sm:$0xff] }
 0x3d4   :  { %v1988_v56 = vpack.c.bf16 %v1133_v55, %v1132_v54 }
 0x3d5   :  { %1810 = vmatmul.mubr.msk.f32.vlgmr.msra.gmra.mrb[4].mxu1 %vm530_vm3, %v541_v63 }
 0x3d6   :  { %1813 = vmatpush3.xpose.msk.msra.mxu1 %vm453_vm2, %v618_v62  ;;  %1814 = vmatprep.mubr.msk.f32.mxu1 %vm2380_vm0, %v2381_v1 }
 0x3d7   :  { %1817 = vmatprep.subr.mxu1 %v2381_v1 }
 0x3d9   :  { %1815 = vmatmul.mubr.msk.f32.vlgmr.msra.gmra.mrb[6].mxu1 %vm453_vm2, %v616_v2 }
 0x3da   :  { %1819 = vmatprep.mubr.msk.f32.mxu1 %vm2380_vm0, %v2381_v1 }
 0x4a8   :  { %v2761_v3 = vpop.f32.mrb[4].mxu1 }
 0x4a9   :  { %v1811_v4 = vpop.f32.mrb[5].mxu1 }
 0x4ac   :  { %v689_v5 = vpop.f32.mrb[6].mxu1 }
 0x4ad   :  { %v1816_v6 = vpop.f32.mrb[7].mxu1  ;;  %v693_v7 = vsel %vm530_vm3, %v689_v5, -inf }
 0x4ae   :  { %694 = vmax.xlane.f32.xlu0 %v693_v7 }
 0x4c4   :  { %705 = vrot.lane.b32.xlu0 %v2749_v58, %s2382_s28 }
 0x4c8   :  { %783 = vrot.lane.b32.xlu0 %v2700_v30, %s2383_s10 }
 0x4cc   :  { %781 = vrot.lane.b32.xlu0 %v2706_v35, %s2383_s10 }
 0x4d0   :  { %948 = vrot.lane.b32.xlu0 %v2700_v30, %s2384_s5 }
 0x53b   :  { %v695_v8 = vpop.xlane.xlu0 %694 }
 0x53c   :  { %v696_v9 = vsub.f32 %v689_v5, %v695_v8 }
 0x53e   :  { %v697_v10 = vmul.f32 1.442695, %v696_v9  ;;  %v1642_v9 = vld [vmem:[#allocation11] ss:$0 sm:$0xff] }
 0x53f   :  { %v706_v11 = vpop.permute.xlu0 %705 }
 0x540   :  { %2074 = vpow2.f32 %v697_v10  ;;  %1818 = vmatpush3.msra.mxu1 %v706_v11 }
 0x541   :  { %1822 = vmatprep.subr.mxu1 %v2381_v1 }
 0x543   :  { %v784_v12 = vpop.permute.xlu0 %783 }
 0x547   :  { %v782_v13 = vpop.permute.xlu0 %781 }
 0x54a   :  { %v2075_v14 = vpop.eup %2074 }
 0x54b   :  { %v949_v15 = vpop.permute.xlu0 %948  ;;  %v699_v16 = vsel %vm530_vm3, %v2075_v14, 0.0 }
 0x54c   :  { %700 = vadd.xlane.f32.xlu1 %v699_v16  ;;  %1833 = vmatpush3.xpose.msk.msra.mxu0 %vm453_vm2, %v949_v15 }
 0x54d   :  { %1981 = vmatprep.subr.bf16.mxu0 %v2379_v0 }
 0x55d   :  { %946 = vrot.lane.b32.xlu1 %v2706_v35, %s2384_s5 }
 0x5d9   :  { %v701_v17 = vpop.xlane.xlu1 %700 }
 0x5da   :  { %2076 = vrcp.f32 %v701_v17 }
 0x5dd   :  { %v947_v18 = vpop.permute.xlu1 %946 }
 0x5de   :  { %1835 = vmatmul.mubr.msk.f32.vlgmr.msra.gmra.mrb[4].mxu0 %vm453_vm2, %v947_v18 }
 0x5df   :  { %1858 = vmatprep.mubr.msk.f32.mxu0 %vm2380_vm0, %v2381_v1  ;;  %1983 = vmatpush3.bf16.msra.mxu0 %v1982_v51  ;;  %v2024_v51 = vpack.c.bf16 %v1349_v50, %v1348_v49 }
 0x5e0   :  { %1984 = vmatprep.subr.bf16.mxu0 %v2379_v0 }
 0x5e3   :  { %1986 = vmatpush3.bf16.msra.mxu0 %v1985_v53 }
 0x5e4   :  { %v2077_v19 = vpop.eup %2076  ;;  %1987 = vmatprep.subr.bf16.mxu0 %v2379_v0 }
 0x5e5   :  { %v703_v20 = vmul.f32 %v2077_v19, %v2075_v14  ;;  %v1247_v19 = vld [vmem:[%s2980_s11] sm:$0xff] }
 0x5e7   :  { %1820 = vmatmul.mubr.msk.f32.vlgmr.msra.gmra.mrb[8].mxu1 %vm530_vm3, %v703_v20  ;;  %1989 = vmatpush3.bf16.msra.mxu0 %v1988_v56  ;;  %v1644_v56 = vld [vmem:[#allocation13] ss:$0 sm:$0xff] }
 0x5e8   :  { %1823 = vmatpush3.xpose.msk.msra.mxu1 %vm453_vm2, %v784_v12  ;;  %1824 = vmatprep.mubr.msk.f32.mxu1 %vm2380_vm0, %v2381_v1 }
 0x5e9   :  { %1827 = vmatprep.subr.mxu1 %v2381_v1  ;;  %1990 = vmatprep.subr.bf16.mxu0 %v2379_v0 }
 0x5eb   :  { %1825 = vmatmul.mubr.msk.f32.vlgmr.msra.gmra.mrb[10].mxu1 %vm453_vm2, %v782_v13 }
 0x5ec   :  { %1829 = vmatprep.mubr.msk.f32.mxu1 %vm2380_vm0, %v2381_v1 }
 0x6b1   :  { %v1020_v21 = vpop.f32.mrb[4].mxu0 }
 0x6b2   :  { %v1836_v22 = vpop.f32.mrb[5].mxu0  ;;  %v1024_v23 = vsel %vm530_vm3, %v1020_v21, -inf }
 0x6b3   :  { %1025 = vmax.xlane.f32.xlu1 %v1024_v23  ;;  %v1250_v22 = vld [vmem:[%s2980_s11 + $0x18] sm:$0xff] }
 0x6ba   :  { %v777_v24 = vpop.f32.mrb[8].mxu1 }
 0x6bb   :  { %v1821_v25 = vpop.f32.mrb[9].mxu1 }
 0x6bc   :  { %v1252_v25 = vld [vmem:[%s2980_s11 + $0x28] sm:$0xff] }
 0x6be   :  { %v855_v27 = vpop.f32.mrb[10].mxu1 }
 0x6bf   :  { %v1826_v28 = vpop.f32.mrb[11].mxu1  ;;  %v859_v29 = vsel %vm530_vm3, %v855_v27, -inf }
 0x6c0   :  { %860 = vmax.xlane.f32.xlu0 %v859_v29  ;;  %v1253_v28 = vld [vmem:[%s2980_s11 + $0x30] sm:$0xff]  ;;  %v1254_v29 = vld [vmem:[%s2980_s11 + $0x38] sm:$0xff] }
 0x6c4   :  { %1035 = vrot.lane.b32.xlu1 %v2749_v58, %s2384_s5 }
 0x740   :  { %v1026_v30 = vpop.xlane.xlu1 %1025 }
 0x741   :  { %v1027_v31 = vsub.f32 %v1020_v21, %v1026_v30  ;;  %v1249_v21 = vld [vmem:[%s2980_s11 + $0x10] sm:$0xff]  ;;  %v2003_v30 = vpack.c.bf16 %v1254_v29, %v1253_v28  ;;  %v1522_v28 = vld [vmem:[%s2986_s17 + $0x18] sm:$0xff] }
 0x742   :  { %v1997_v23 = vpack.c.bf16 %v1250_v22, %v1249_v21 }
 0x743   :  { %v1028_v32 = vmul.f32 1.442695, %v1027_v31  ;;  %v1336_v31 = vld [vmem:[%s2982_s13] sm:$0xff] }
 0x744   :  { %v1036_v46 = vpop.permute.xlu1 %1035 }
 0x745   :  { %2078 = vpow2.f32 %v1028_v32  ;;  %v1337_v32 = vld [vmem:[%s2982_s13 + $0x8] sm:$0xff] }
 0x74d   :  { %v861_v33 = vpop.xlane.xlu0 %860 }
 0x74e   :  { %v862_v34 = vsub.f32 %v855_v27, %v861_v33  ;;  %v1338_v33 = vld [vmem:[%s2982_s13 + $0x10] sm:$0xff] }
 0x74f   :  { %v2079_v35 = vpop.eup %2078 }
 0x750   :  { %v863_v36 = vmul.f32 1.442695, %v862_v34  ;;  %v1030_v37 = vsel %vm530_vm3, %v2079_v35, 0.0  ;;  %v2006_v34 = vpack.c.bf16 %v1337_v32, %v1336_v31 }
 0x751   :  { %1031 = vadd.xlane.f32.xlu0 %v1030_v37  ;;  %v1340_v37 = vld [vmem:[%s2982_s13 + $0x20] sm:$0xff] }
 0x752   :  { %2080 = vpow2.f32 %v863_v36 }
 0x75c   :  { %v2081_v38 = vpop.eup %2080 }
 0x75d   :  { %v865_v39 = vsel %vm530_vm3, %v2081_v38, 0.0 }
 0x75e   :  { %866 = vadd.xlane.f32.xlu0 %v865_v39 }
 0x774   :  { %870 = vrot.lane.b32.xlu0 %v2749_v58, %s2383_s10  ;;  %v1135_v58 = vld [vmem:[#allocation10 + $0x38] sm:$0xff]  ;;  %s2388_s10 = smov [#allocation20]  }
 0x775   :  { %v1991_v59 = vpack.c.bf16 %v1135_v58, %v1134_v57  ;;  %v1645_v58 = vld [vmem:[#allocation14] ss:$0 sm:$0xff]  ;;  %s1610_s5 = sshll.u32 %s2388_s10, 4  ;;  %s1611_s5 = int_to_ptr.vmem [resolvable:$true] %s1610_s5 }
 0x776   :  { %p2335_p5 = scmp.lt.s32.totalorder %s1611_s5, %s1611_s5 }
 0x777   :  { %1992 = vmatpush3.bf16.msra.mxu0 %v1991_v59 }
 0x778   :  { %1112 = vrot.lane.b32.xlu0 %v777_v24, %s2385_s26  ;;  %2005 = vmatprep.subr.bf16.mxu0 %v2379_v0  ;;  %v1251_v24 = vld [vmem:[%s2980_s11 + $0x20] sm:$0xff] }
 0x779   :  { %v2000_v27 = vpack.c.bf16 %v1252_v25, %v1251_v24 }
 0x7de   :  { %v1032_v40 = vpop.xlane.xlu0 %1031 }
 0x7eb   :  { %v867_v41 = vpop.xlane.xlu0 %866 }
 0x7ec   :  { %2082 = vrcp.f32 %v867_v41  ;;  %v1343_v41 = vld [vmem:[%s2982_s13 + $0x38] sm:$0xff] }
 0x7ed   :  { %2084 = vrcp.f32 %v1032_v40  ;;  %v1342_v40 = vld [vmem:[%s2982_s13 + $0x30] sm:$0xff] }
 0x7ef   :  { %v871_v42 = vpop.permute.xlu0 %870 }
 0x7f0   :  { %1828 = vmatpush3.msra.mxu1 %v871_v42  ;;  %v2015_v42 = vpack.c.bf16 %v1343_v41, %v1342_v40 }
 0x7f1   :  { %1837 = vmatprep.subr.mxu1 %v2381_v1 }
 0x7f3   :  { %v1113_v2 = vpop.permute.xlu0 %1112 }
 0x7f4   :  { %v1123_v5 = vsel %vm453_vm2, %v2761_v3, %v1113_v2  ;;  %v1430_v2 = vld [vmem:[%s2984_s15] sm:$0xff] }
 0x7f6   :  { %v2083_v43 = vpop.eup %2082 }
 0x7f7   :  { %v869_v44 = vmul.f32 %v2083_v43, %v2081_v38  ;;  %v2085_v45 = vpop.eup %2084  ;;  %v1341_v38 = vld [vmem:[%s2982_s13 + $0x28] sm:$0xff]  ;;  %v1344_v43 = vld [vmem:[%s2982_s13 + $0x40] sm:$0xff] }
 0x7f8   :  { %v1034_v47 = vmul.f32 %v2085_v45, %v2079_v35  ;;  %v1339_v35 = vld [vmem:[%s2982_s13 + $0x18] sm:$0xff]  ;;  %v2012_v39 = vpack.c.bf16 %v1341_v38, %v1340_v37 }
 0x7f9   :  { %1830 = vmatmul.mubr.msk.f32.vlgmr.msra.gmra.mrb[12].mxu1 %vm530_vm3, %v869_v44  ;;  %v2009_v36 = vpack.c.bf16 %v1339_v35, %v1338_v33  ;;  %v1345_v44 = vld [vmem:[%s2982_s13 + $0x48] sm:$0xff] }
 0x7fa   :  { %1838 = vmatpush3.msra.mxu1 %v1036_v46  ;;  %1839 = vmatprep.mubr.msk.f32.mxu1 %vm2380_vm0, %v2381_v1  ;;  %v2018_v45 = vpack.c.bf16 %v1345_v44, %v1344_v43  ;;  %v1346_v46 = vld [vmem:[%s2982_s13 + $0x50] sm:$0xff] }
 0x7fb   :  { %1993 = vmatprep.subr.bf16.mxu1 %v2379_v0 }
 0x7fd   :  { %1840 = vmatmul.mubr.msk.f32.vlgmr.msra.gmra.mrb[14].mxu1 %vm530_vm3, %v1034_v47  ;;  %v1347_v47 = vld [vmem:[%s2982_s13 + $0x58] sm:$0xff] }
 0x7fe   :  { %1877 = vmatprep.mubr.msk.f32.mxu1 %vm2380_vm0, %v2381_v1  ;;  %v2021_v48 = vpack.c.bf16 %v1347_v47, %v1346_v46 }
 0x8cc   :  { %v942_v60 = vpop.f32.mrb[12].mxu1 }
 0x8cd   :  { %1116 = vrot.lane.b32.xlu0 %v942_v60, %s2386_s29  ;;  %v1831_v61 = vpop.f32.mrb[13].mxu1 }
 0x8ce   :  { %v1350_v61 = vld [vmem:[%s2982_s13 + $0x70] sm:$0xff] }
 0x8d0   :  { %v1107_v62 = vpop.f32.mrb[14].mxu1 }
 0x8d1   :  { %1120 = vrot.lane.b32.xlu1 %v1107_v62, %s2387_s1  ;;  %v1841_v63 = vpop.f32.mrb[15].mxu1  ;;  %v1351_v62 = vld [vmem:[%s2982_s13 + $0x78] sm:$0xff] }
 0x8d2   :  { %v2027_v63 = vpack.c.bf16 %v1351_v62, %v1350_v61 }
 0x93f   :  { %v1117_v4 = vpop.permute.xlu0 %1116 }
 0x940   :  { %v1125_v6 = vsel %vm1124_vm4, %v1123_v5, %v1117_v4  ;;  %v1431_v4 = vld [vmem:[%s2984_s15 + $0x8] sm:$0xff]  ;;  %v1432_v5 = vld [vmem:[%s2984_s15 + $0x10] sm:$0xff] }
 0x943   :  { %v1121_v7 = vpop.permute.xlu1 %1120 }
 0x944   :  { %v1127_v8 = vsel %vm1126_vm5, %v1125_v6, %v1121_v7  ;;  %v2030_v6 = vpack.c.bf16 %v1431_v4, %v1430_v2  ;;  %v1433_v7 = vld [vmem:[%s2984_s15 + $0x18] sm:$0xff] }
 0x945   :  { %1859 = vmatmul.mubr.msk.f32.vlgmr.msra.gmra.mrb[6].mxu0 %vm208_vm1, %v1127_v8  ;;  %v2033_v8 = vpack.c.bf16 %v1433_v7, %v1432_v5 }
 0x946   :  { %1912 = vmatprep.mubr.msk.f32.mxu0 %vm2380_vm0, %v2381_v1  ;;  %2007 = vmatpush3.bf16.msra.mxu0 %v2006_v34 }
 0x947   :  { %2008 = vmatprep.subr.bf16.mxu0 %v2379_v0 }
 0x94a   :  { %2010 = vmatpush3.bf16.msra.mxu0 %v2009_v36 }
 0x94b   :  { %2011 = vmatprep.subr.bf16.mxu0 %v2379_v0 }
 0x94e   :  { %2013 = vmatpush3.bf16.msra.mxu0 %v2012_v39 }
 0x94f   :  { %2014 = vmatprep.subr.bf16.mxu0 %v2379_v0 }
 0x952   :  { %2016 = vmatpush3.bf16.msra.mxu0 %v2015_v42 }
 0x953   :  { %2017 = vmatprep.subr.bf16.mxu0 %v2379_v0 }
 0x956   :  { %2019 = vmatpush3.bf16.msra.mxu0 %v2018_v45 }
 0x957   :  { %2020 = vmatprep.subr.bf16.mxu0 %v2379_v0 }
 0x95a   :  { %2022 = vmatpush3.bf16.msra.mxu0 %v2021_v48 }
 0x95b   :  { %2023 = vmatprep.subr.bf16.mxu0 %v2379_v0 }
 0x95e   :  { %2025 = vmatpush3.bf16.msra.mxu0 %v2024_v51 }
 0x95f   :  { %2026 = vmatprep.subr.bf16.mxu0 %v2379_v0 }
 0x962   :  { %2028 = vmatpush3.bf16.msra.mxu0 %v2027_v63 }
 0xa18   :  { %v1212_v10 = vpop.f32.mrb[6].mxu0 }
 0xa19   :  { %v1213_v11 = vadd.f32 %v1642_v9, %v1212_v10  ;;  %v1860_v12 = vpop.f32.mrb[7].mxu0  ;;  %v1434_v9 = vld [vmem:[%s2984_s15 + $0x20] sm:$0xff]  ;;  %v1435_v10 = vld [vmem:[%s2984_s15 + $0x28] sm:$0xff] }
 0xa1a   :  { %v1646_v12 = vld [vmem:[#allocation16] ss:$0 sm:$0xff] }
 0xa1b   :  { %v1216_v13 = vadd.f32 %v1213_v11, %v2688_v26  ;;  %v1248_v26 = vld [vmem:[%s2980_s11 + $0x8] sm:$0xff]  ;;  %v2036_v11 = vpack.c.bf16 %v1435_v10, %v1434_v9 }
 0xa1c   :  { %v1994_v20 = vpack.c.bf16 %v1248_v26, %v1247_v19  ;;  %v1648_v19 = vld [vmem:[#allocation17] ss:$0 sm:$0xff]  ;;  %v1519_v26 = vld [vmem:[%s2986_s17] sm:$0xff] }
 0xa1d   :  { %v1219_v14 = vsel %vm208_vm1, %v1216_v13, 0.0 }
 0xa1e   :  { %1220 = vadd.xlane.f32.xlu0 %v1219_v14  ;;  %1995 = vmatpush3.bf16.msra.mxu1 %v1994_v20  ;;  %v1520_v20 = vld [vmem:[%s2986_s17 + $0x8] sm:$0xff] }
 0xa1f   :  { %1996 = vmatprep.subr.bf16.mxu1 %v2379_v0  ;;  %v2042_v24 = vpack.c.bf16 %v1520_v20, %v1519_v26 }
 0xa22   :  { %1998 = vmatpush3.bf16.msra.mxu1 %v1997_v23 }
 0xa23   :  { %1999 = vmatprep.subr.bf16.mxu1 %v2379_v0 }
 0xa26   :  { %2001 = vmatpush3.bf16.msra.mxu1 %v2000_v27  ;;  %v1521_v27 = vld [vmem:[%s2986_s17 + $0x10] sm:$0xff]  ;;  %s2330_s17 = scalar_lea.vmem %s1611_s5, 128 }
 0xa27   :  { %2002 = vmatprep.subr.bf16.mxu1 %v2379_v0  ;;  %v2045_v29 = vpack.c.bf16 %v1522_v28, %v1521_v27  ;;  %p2331_p4 = scmp.ne.s32.totalorder %s1611_s5, %s2330_s17  ;;  %p2336_p6 = scmp.lt.s32.totalorder %s2330_s17, %s2330_s17 }
 0xa29   :  { %p2337_p7 = por %p2336_p6, %p2335_p5 }
 0xa2a   :  { %2004 = vmatpush3.bf16.msra.mxu1 %v2003_v30  ;;  %v1649_v30 = vld [vmem:[#allocation19] ss:$0 sm:$0xff] }
 0xa2b   :  { %2029 = vmatprep.subr.bf16.mxu1 %v2379_v0  ;;  %p2338_p8 = pnand %p2337_p7, %p2331_p4 }
 0xaab   :  { %v1221_v15 = vpop.xlane.xlu0 %1220 }
 0xaac   :  { %v1223_v3 = vmul.f32 0.015625, %v1221_v15 }
 0xaae   :  { %v2817_v16 = vsub.f32 %v1216_v13, %v1223_v3 }
 0xab0   :  { %v1225_v17 = vmul.f32 %v2817_v16, %v2817_v16 }
 0xab2   :  { %v1226_v18 = vsel %vm208_vm1, %v1225_v17, 0.0  ;;  %v1437_v17 = vld [vmem:[%s2984_s15 + $0x38] sm:$0xff] }
 0xab3   :  { %1227 = vadd.xlane.f32.xlu1 %v1226_v18 }
 0xb40   :  { %v1228_v52 = vpop.xlane.xlu1 %1227 }
 0xb41   :  { %v1229_v53 = vmul.f32 0.015625, %v1228_v52 }
 0xb43   :  { %v1230_v54 = vadd.f32 1e-05, %v1229_v53 }
 0xb45   :  { %2086 = vrsqrt.f32 %v1230_v54 }
 0xb4f   :  { %v2087_v55 = vpop.eup %2086 }
 0xb50   :  { %v1232_v57 = vmul.f32 %v2087_v55, %v2817_v16  ;;  %v1436_v16 = vld [vmem:[%s2984_s15 + $0x30] sm:$0xff] }
 0xb51   :  { %v2039_v18 = vpack.c.bf16 %v1437_v17, %v1436_v16 }
 0xb52   :  { %v1239_v59 = vmul.f32 %v1644_v56, %v1232_v57 }
 0xb54   :  { %v1246_v60 = vadd.f32 %v1645_v58, %v1239_v59 }
 0xb56   :  { %1878 = vmatmul.mubr.msk.f32.vlgmr.msra.gmra.mrb[16].mxu1 %vm208_vm1, %v1246_v60 }
 0xb57   :  { %1931 = vmatprep.mubr.msk.f32.mxu1 %vm2380_vm0, %v2381_v1  ;;  %2031 = vmatpush3.bf16.msra.mxu1 %v2030_v6 }
 0xb58   :  { %2032 = vmatprep.subr.bf16.mxu1 %v2379_v0 }
 0xb5b   :  { %2034 = vmatpush3.bf16.msra.mxu1 %v2033_v8 }
 0xb5c   :  { %2035 = vmatprep.subr.bf16.mxu1 %v2379_v0 }
 0xb5f   :  { %2037 = vmatpush3.bf16.msra.mxu1 %v2036_v11 }
 0xb60   :  { %2038 = vmatprep.subr.bf16.mxu1 %v2379_v0 }
 0xb63   :  { %2040 = vmatpush3.bf16.msra.mxu1 %v2039_v18 }
 0xb64   :  { %2041 = vmatprep.subr.bf16.mxu1 %v2379_v0 }
 0xc29   :  { %v1331_v13 = vpop.f32.mrb[16].mxu1 }
 0xc2a   :  { %v1332_v14 = vadd.f32 %v1646_v12, %v1331_v13  ;;  %v1879_v15 = vpop.f32.mrb[17].mxu1 }
 0xc2c   :  { %v1335_v3 = vmax.f32 %v1332_v14, 0.0 }
 0xc2e   :  { %1913 = vmatmul.mubr.f32.vlgmr.msra.gmra.mrb[8].mxu0 %v1335_v3 }
 0xd01   :  { %v1425_v21 = vpop.f32.mrb[8].mxu0 }
 0xd02   :  { %v1426_v22 = vadd.f32 %v1648_v19, %v1425_v21  ;;  %v1914_v23 = vpop.f32.mrb[9].mxu0 }
 0xd04   :  { %v1429_v25 = vmax.f32 %v1426_v22, 0.0 }
 0xd06   :  { %1932 = vmatmul.mubr.msk.f32.vlgmr.msra.gmra.mrb[18].mxu1 %vm208_vm1, %v1429_v25 }
 0xd07   :  { %2043 = vmatpush3.bf16.msra.mxu1 %v2042_v24  ;;  %1942 = vmatprep.mubr.msk.f32.mxu1 %vm2380_vm0, %v2381_v1 }
 0xd08   :  { %2044 = vmatprep.subr.bf16.mxu1 %v2379_v0  ;;  %v1651_v0 = vld [vmem:[%s2987_s18] ss:$0 sm:$0xff] }
 0xd0b   :  { %2046 = vmatpush3.bf16.msra.mxu1 %v2045_v29 }
 0xdd9   :  { %v1514_v31 = vpop.f32.mrb[18].mxu1 }
 0xdda   :  { %v1515_v32 = vadd.f32 %v1649_v30, %v1514_v31  ;;  %v1933_v33 = vpop.f32.mrb[19].mxu1 }
 0xddc   :  { %v1518_v34 = vmax.f32 %v1515_v32, 0.0 }
 0xdde   :  { %1943 = vmatmul.mubr.msk.f32.vlgmr.msra.gmra.mrb[20].mxu1 %vm1124_vm4, %v1518_v34 }
 0xeb1   :  { %v1599_v1 = vpop.f32.mrb[20].mxu1 }
 0xeb2   :  { %v1600_v35 = vadd.f32 %v1651_v0, %v1599_v1  ;;  %v1944_v36 = vpop.f32.mrb[21].mxu1 }
 0xeb4   :  { %1603 = vst [vmem:[#allocation20] sm:$0xff] %v1600_v35 }
 0xeb5   :  { %2341 = shalt.err (!%p2338_p8)
}
 0xeb6   :  { %s2342_s11 = scalar_lea.hbm %s2988_s19, 128 }
 0xeb7   :  { %p2343_p9 = scmp.ne.s32.totalorder %s2988_s19, %s2342_s11  ;;  %p2346_p10 = scmp.lt.u32.totalorder %s2342_s11, %s2988_s19 }
 0xeb9   :  { %p2348_p11 = pnand %p2346_p10, %p2343_p9 }
 0xebb   :  { %2351 = shalt.err (!%p2348_p11)
}
 0xebc   :  { %1613 = dma.vmem_to_hbm [thread:$0]  %s1611_s5, 128, %s2988_s19, [#allocation4]  }
 0xebd   :  { %2364 = dma.done.wait [#allocation4], 128  }
 0xebe   :  { %2365 = vsyncadd [#allocation4], 4294967168 }
 0xebf   :  { %1617 = vsyncpa [#allocation3], 1 }
 0xec0   :  { %1618 = vsyncpa [#allocation6], 1 }
 0xec1   :  { %1619 = vsyncpa [#allocation9], 1 }
 0xec2   :  { %1620 = vsyncpa [#allocation12], 1 }
 0xec3   :  { %1621 = vsyncpa [#allocation15], 1 }
 0xec4   :  { %1622 = vsyncpa [#allocation18], 1 }
 0xec5   :  { %1623 = vsyncpa [#allocation4], 1 }

</bundles_post_ra>
